<compile_context>
chip_gen: v7x
topology: tpu7x:2x2x1
jax: 0.10.0
libtpu: 0.0.40
codegen_flags: <defaults>
</compile_context>

<pallas_src>
import math
import functools

import jax
import jax.numpy as jnp
from jax.experimental import pallas as pl
from jax.experimental.pallas import tpu as pltpu


def _round_up(a: int, b: int) -> int:
    return ((a + b - 1) // b) * b


def _cdiv(a: int, b: int) -> int:
    return -(-a // b)


def _pos_emb_kernel(x_ref, f_ref, o_ref, *, dim: int, half: int, k: int):
    """x_ref: (bm_f, k) positions; f_ref: (1, half) scale-folded freqs (resident);
    o_ref: (bm_f, k*dim) lane-folded output (k logical rows per output row)."""
    # Hoist the sublane broadcast of the freq row out of the j-loop.
    f_b = jnp.broadcast_to(f_ref[...], (x_ref.shape[0], half))     # (bm_f, half)
    for j in range(k):                                             # k static (1..64)
        arg = x_ref[:, j:j + 1] * f_b                              # outer(x, scale*freqs)
        o_ref[:, j * dim: j * dim + half] = jnp.sin(arg).astype(o_ref.dtype)
        o_ref[:, j * dim + half: (j + 1) * dim] = jnp.cos(arg).astype(o_ref.dtype)


def positional_embedding(x, dim: int, scale: float = 1.0, *,
                         out_dtype=jnp.float32,
                         vmem_budget_bytes: int = 10 * 1024 * 1024):
    """x: (N,) float array of positions/timesteps. Returns (N, dim) in out_dtype."""
    assert dim % 2 == 0
    half = dim // 2
    n = int(x.shape[0])
    out_itemsize = jnp.dtype(out_dtype).itemsize

    # Lane-folding factor: pack k logical rows per output row so the output
    # tile is 128 lanes wide (lane-dense DMA) when dim < 128.
    k = 128 // dim if (dim < 128 and 128 % dim == 0) else 1
    row_w = k * dim                                   # folded output row width
    unit_f = max(8, 32 // out_itemsize)               # sublane granule (8 f32, 16 bf16)

    # --- Tile sizing from a VMEM working-set budget (all buffers 2x-buffered).
    row_out_vmem = _round_up(row_w, 128) * out_itemsize   # output tile bytes / folded row
    row_x_vmem = 128 * 4                                  # x block pads k -> 128 lanes
    per_row = 2 * (row_out_vmem + row_x_vmem)
    budget_rows = max(unit_f, (vmem_budget_bytes // per_row) // unit_f * unit_f)

    n_f = _cdiv(n, k)                                     # folded rows needed
    # Prefer >= ~4 grid steps for v7x dual-TC sharding, but keep tiles >= ~256 KiB.
    min_rows = _round_up(max(unit_f, _cdiv(256 * 1024, max(row_w * out_itemsize, 1))), unit_f)
    quarter_rows = _round_up(_cdiv(n_f, 4), unit_f)
    bm_f = min(budget_rows, max(quarter_rows, min_rows))
    bm_f = max(unit_f, min(bm_f, _round_up(n_f, unit_f)))  # don't over-pad tiny inputs

    n_f_pad = _round_up(n_f, bm_f)
    n_pad = n_f_pad * k
    grid = (n_f_pad // bm_f,)

    xf = x.astype(jnp.float32).reshape(-1)
    if n_pad != n:
        xf = jnp.pad(xf, (0, n_pad - n))
    x2d = xf.reshape(n_f_pad, k)

    # Frequencies computed once in the wrapper; scale folded in (resident input).
    freqs = (scale * jnp.exp(
        jnp.arange(half, dtype=jnp.float32) * (-(math.log(10000.0) / half))
    )).reshape(1, half)

    kernel = functools.partial(_pos_emb_kernel, dim=dim, half=half, k=k)

    cost = pl.CostEstimate(
        flops=2 * n_pad * dim,
        transcendentals=n_pad * dim,
        bytes_accessed=n_pad * 4 + n_pad * dim * out_itemsize + half * 4,
    )

    out_folded = pl.pallas_call(
        kernel,
        out_shape=jax.ShapeDtypeStruct((n_f_pad, row_w), out_dtype),
        grid_spec=pltpu.PrefetchScalarGridSpec(
            num_scalar_prefetch=0,
            grid=grid,
            in_specs=[
                pl.BlockSpec((bm_f, k), lambda i: (i, 0)),     # x: per-step block
                pl.BlockSpec((1, half), lambda i: (0, 0)),     # freqs: resident
            ],
            out_specs=pl.BlockSpec((bm_f, row_w), lambda i: (i, 0)),
        ),
        compiler_params=pltpu.CompilerParams(
            dimension_semantics=("parallel",),
        ),
        cost_estimate=cost,
    )(x2d, freqs)

    out = out_folded.reshape(n_pad, dim)   # free: same row-major layout
    return out if n_pad == n else out[:n]


def _reference(x, dim, scale=1.0):
    half = dim // 2
    emb = math.log(10000.0) / half
    freqs = jnp.exp(jnp.arange(half, dtype=jnp.float32) * -emb)
    outer = jnp.outer(x.astype(jnp.float32) * scale, freqs)
    return jnp.concatenate([jnp.sin(outer), jnp.cos(outer)], axis=-1)


if __name__ == "__main__":
    key = jax.random.PRNGKey(0)
    k1, k2, k3 = jax.random.split(key, 3)

    # Case 1: dim < 128 -> lane-folded output path (k = 4), scale = 1.0.
    N1, DIM1 = 8, 32
    x1 = jax.random.uniform(k1, (N1,), dtype=jnp.float32, minval=0.0, maxval=1000.0)
    out1 = jax.block_until_ready(positional_embedding(x1, DIM1, 1.0))
    ref1 = _reference(x1, DIM1, 1.0)
    assert out1.shape == (N1, DIM1), out1.shape
    assert jnp.allclose(out1, ref1, atol=1e-5, rtol=1e-5), float(jnp.max(jnp.abs(out1 - ref1)))

    # Case 2: dim >= 128 (k = 1, unmasked half stores), N needing padding,
    # scale = 0.5 (power of two -> exact reassociation of the folded scale).
    N2, DIM2 = 20, 256
    x2 = jax.random.uniform(k2, (N2,), dtype=jnp.float32, minval=0.0, maxval=1000.0)
    out2 = jax.block_until_ready(positional_embedding(x2, DIM2, 0.5))
    ref2 = _reference(x2, DIM2, 0.5)
    assert out2.shape == (N2, DIM2), out2.shape
    assert jnp.allclose(out2, ref2, atol=1e-5, rtol=1e-5), float(jnp.max(jnp.abs(out2 - ref2)))

    # Case 3: bf16 output path (halved HBM writeback), dim = 128.
    N3, DIM3 = 24, 128
    x3 = jax.random.uniform(k3, (N3,), dtype=jnp.float32, minval=0.0, maxval=1000.0)
    out3 = jax.block_until_ready(positional_embedding(x3, DIM3, 1.0, out_dtype=jnp.bfloat16))
    ref3 = _reference(x3, DIM3, 1.0)
    assert out3.shape == (N3, DIM3), out3.shape
    assert jnp.allclose(out3.astype(jnp.float32), ref3, atol=1e-2, rtol=1e-2), \
        float(jnp.max(jnp.abs(out3.astype(jnp.float32) - ref3)))

    print("KERNEL_OK")
</pallas_src>

<mosaic_0001>
module attributes {stable_mosaic.version = 11 : i64} {
  func.func @_pos_emb_kernel(%arg0: i32, %arg1: memref<8x4xf32, #tpu.memory_space<vmem>>, %arg2: memref<1x16xf32, #tpu.memory_space<vmem>>, %arg3: memref<8x128xf32, #tpu.memory_space<vmem>>) attributes {dimension_semantics = [#tpu.dimension_semantics<parallel>], iteration_bounds = array<i64: 1>, scalar_prefetch = 0 : i64, scratch_operands = 0 : i64, tpu.core_type = #tpu.core_type<tc>, window_params = [{transform_indices = @transform_0, window_bounds = array<i64: 8, 4>}, {pipeline_mode = #tpu.pipeline_mode<synchronous>, transform_indices = @transform_1, window_bounds = array<i64: 1, 16>}, {transform_indices = @transform_2, window_bounds = array<i64: 8, 128>}]} {
    %c0 = arith.constant 0 : index
    %c0_0 = arith.constant 0 : index
    %0 = vector.load %arg2[%c0, %c0_0] : memref<1x16xf32, #tpu.memory_space<vmem>>, vector<1x16xf32>
    %1 = vector.shape_cast %0 : vector<1x16xf32> to vector<1x16xf32>
    %2 = vector.broadcast %1 : vector<1x16xf32> to vector<8x16xf32>
    %c0_1 = arith.constant 0 : index
    %c0_2 = arith.constant 0 : index
    %3 = vector.load %arg1[%c0_1, %c0_2] : memref<8x4xf32, #tpu.memory_space<vmem>>, vector<8x1xf32>
    %4 = vector.broadcast %3 : vector<8x1xf32> to vector<8x16xf32>
    %5 = arith.mulf %4, %2 : vector<8x16xf32>
    %6 = math.sin %5 : vector<8x16xf32>
    %c0_3 = arith.constant 0 : index
    %c0_4 = arith.constant 0 : index
    %7 = vector.load %arg3[%c0_3, %c0_4] : memref<8x128xf32, #tpu.memory_space<vmem>>, vector<8x16xf32>
    tpu.vector_store %arg3[%c0_3, %c0_4], %6 {strides = array<i32>} : memref<8x128xf32, #tpu.memory_space<vmem>>, vector<8x16xf32>,
    %8 = math.cos %5 : vector<8x16xf32>
    %c0_5 = arith.constant 0 : index
    %c16 = arith.constant 16 : index
    %9 = vector.load %arg3[%c0_5, %c16] : memref<8x128xf32, #tpu.memory_space<vmem>>, vector<8x16xf32>
    tpu.vector_store %arg3[%c0_5, %c16], %8 {strides = array<i32>} : memref<8x128xf32, #tpu.memory_space<vmem>>, vector<8x16xf32>,
    %c0_6 = arith.constant 0 : index
    %c1 = arith.constant 1 : index
    %10 = vector.load %arg1[%c0_6, %c1] : memref<8x4xf32, #tpu.memory_space<vmem>>, vector<8x1xf32>
    %11 = vector.broadcast %10 : vector<8x1xf32> to vector<8x16xf32>
    %12 = arith.mulf %11, %2 : vector<8x16xf32>
    %13 = math.sin %12 : vector<8x16xf32>
    %c0_7 = arith.constant 0 : index
    %c32 = arith.constant 32 : index
    %14 = vector.load %arg3[%c0_7, %c32] : memref<8x128xf32, #tpu.memory_space<vmem>>, vector<8x16xf32>
    tpu.vector_store %arg3[%c0_7, %c32], %13 {strides = array<i32>} : memref<8x128xf32, #tpu.memory_space<vmem>>, vector<8x16xf32>,
    %15 = math.cos %12 : vector<8x16xf32>
    %c0_8 = arith.constant 0 : index
    %c48 = arith.constant 48 : index
    %16 = vector.load %arg3[%c0_8, %c48] : memref<8x128xf32, #tpu.memory_space<vmem>>, vector<8x16xf32>
    tpu.vector_store %arg3[%c0_8, %c48], %15 {strides = array<i32>} : memref<8x128xf32, #tpu.memory_space<vmem>>, vector<8x16xf32>,
    %c0_9 = arith.constant 0 : index
    %c2 = arith.constant 2 : index
    %17 = vector.load %arg1[%c0_9, %c2] : memref<8x4xf32, #tpu.memory_space<vmem>>, vector<8x1xf32>
    %18 = vector.broadcast %17 : vector<8x1xf32> to vector<8x16xf32>
    %19 = arith.mulf %18, %2 : vector<8x16xf32>
    %20 = math.sin %19 : vector<8x16xf32>
    %c0_10 = arith.constant 0 : index
    %c64 = arith.constant 64 : index
    %21 = vector.load %arg3[%c0_10, %c64] : memref<8x128xf32, #tpu.memory_space<vmem>>, vector<8x16xf32>
    tpu.vector_store %arg3[%c0_10, %c64], %20 {strides = array<i32>} : memref<8x128xf32, #tpu.memory_space<vmem>>, vector<8x16xf32>,
    %22 = math.cos %19 : vector<8x16xf32>
    %c0_11 = arith.constant 0 : index
    %c80 = arith.constant 80 : index
    %23 = vector.load %arg3[%c0_11, %c80] : memref<8x128xf32, #tpu.memory_space<vmem>>, vector<8x16xf32>
    tpu.vector_store %arg3[%c0_11, %c80], %22 {strides = array<i32>} : memref<8x128xf32, #tpu.memory_space<vmem>>, vector<8x16xf32>,
    %c0_12 = arith.constant 0 : index
    %c3 = arith.constant 3 : index
    %24 = vector.load %arg1[%c0_12, %c3] : memref<8x4xf32, #tpu.memory_space<vmem>>, vector<8x1xf32>
    %25 = vector.broadcast %24 : vector<8x1xf32> to vector<8x16xf32>
    %26 = arith.mulf %25, %2 : vector<8x16xf32>
    %27 = math.sin %26 : vector<8x16xf32>
    %c0_13 = arith.constant 0 : index
    %c96 = arith.constant 96 : index
    %28 = vector.load %arg3[%c0_13, %c96] : memref<8x128xf32, #tpu.memory_space<vmem>>, vector<8x16xf32>
    tpu.vector_store %arg3[%c0_13, %c96], %27 {strides = array<i32>} : memref<8x128xf32, #tpu.memory_space<vmem>>, vector<8x16xf32>,
    %29 = math.cos %26 : vector<8x16xf32>
    %c0_14 = arith.constant 0 : index
    %c112 = arith.constant 112 : index
    %30 = vector.load %arg3[%c0_14, %c112] : memref<8x128xf32, #tpu.memory_space<vmem>>, vector<8x16xf32>
    tpu.vector_store %arg3[%c0_14, %c112], %29 {strides = array<i32>} : memref<8x128xf32, #tpu.memory_space<vmem>>, vector<8x16xf32>,
    return
  }
  func.func @transform_0(%arg0: i32) -> (i32, i32) {
    %c0_i32 = arith.constant 0 : i32
    %c0_i32_0 = arith.constant 0 : i32
    return %arg0, %c0_i32 : i32, i32
  }
  func.func @transform_1(%arg0: i32) -> (i32, i32) {
    %c0_i32 = arith.constant 0 : i32
    %c0_i32_0 = arith.constant 0 : i32
    %c0_i32_1 = arith.constant 0 : i32
    return %c0_i32, %c0_i32_0 : i32, i32
  }
  func.func @transform_2(%arg0: i32) -> (i32, i32) {
    %c0_i32 = arith.constant 0 : i32
    %c0_i32_0 = arith.constant 0 : i32
    return %arg0, %c0_i32 : i32, i32
  }
}

</mosaic_0001>

<bundles_post_ra>
// kernel: tpu_custom_call.1
= control target key start
LH: loop header
LB: loop body
LE: loop exit
PB: predicated region body
PF: predicated region fallthrough
CT: control target
= control target key end

     0   :  { %v1045_v1 = vmov 2   ;;  %v1046_v2 = vmov 0   ;;  %s1392_s0 = inlined_call_operand.vmem [shape: f32[8,4], index: 0, kind: input, shape index: {}]   ;;  %s1393_s1 = inlined_call_operand.vmem [shape: f32[1,16], index: 1, kind: input, shape index: {}]   ;;  %s1394_s2 = inlined_call_operand.hbm [shape: f32[8,128], index: 2, kind: output, shape index: {}]  }
   0x1   :  { %v467_v0 = vld [vmem:[%s1392_s0] sm:$0xff]  ;;  %1002 = vset.pattern.permute.xlu1 %v1045_v1  ;;  %1000 = vset.pattern.permute.xlu0 %v1046_v2 }
   0x2   :  { %470 = vperm.xlu1 %1002, %v467_v0   ;;  %22 = vperm.xlu0 %1000, %v467_v0  }
   0x3   :  { %7 = vsyncpa [#allocation3], 0  ;;  %v1047_v3 = vmov 3   ;;  %v1048_v4 = vmov 1   ;;  %v933_v5 = vld [vmem:[%s1393_s1] ss:$0 sm:$0xff] }
   0x4   :  { %v1049_v42 = vmov 683565275   ;;  %v1050_v44 = vmov 2475754826   ;;  %v1051_v46 = vmov 2131351028  }
   0x5   :  { %v1052_v48 = vmov 2102212464   ;;  %v1053_v50 = vmov 920167782   ;;  %v1054_v58 = vmov 1326507024  }
   0x6   :  { %1003 = vset.pattern.permute.xlu1 %v1047_v3  ;;  %1001 = vset.pattern.permute.xlu0 %v1048_v4  ;;  %s1055_s0 = smov 16   ;;  %s1056_s1 = smov 32  }
   0x7   :  { %696 = vperm.xlu1 %1003, %v467_v0   ;;  %244 = vperm.xlu0 %1001, %v467_v0   ;;  %s1057_s13 = smov 48   ;;  %s1058_s14 = smov 64  }
   0x8   :  { %s1059_s15 = smov 80   ;;  %s1060_s16 = smov 96  }
   0x9   :  { %s1061_s17 = smov 112   ;;  %s1062_s18 = smov [#allocation2]  }
   0xa   :  { %s925_s19 = sshll.u32 %s1062_s18, 4  ;;  %s926_s19 = int_to_ptr.vmem [resolvable:$true] %s925_s19 }
   0xb   :  { %1004 = vset.pattern.permute.xlu0 %v1047_v3  ;;  %s1021_s20 = scalar_lea.vmem %s926_s19, 128  ;;  %p1026_p1 = scmp.lt.s32.totalorder %s926_s19, %s926_s19 }
   0xc   :  { %p1022_p0 = scmp.ne.s32.totalorder %s926_s19, %s1021_s20  ;;  %p1027_p2 = scmp.lt.s32.totalorder %s1021_s20, %s1021_s20 }
   0xe   :  { %p1028_p3 = por %p1027_p2, %p1026_p1 }
  0x10   :  { %p1029_p4 = pnand %p1028_p3, %p1022_p0 }
  0x81   :  { %v471_v6 = vpop.permute.xlu1 %470  ;;  %v23_v7 = vpop.permute.xlu0 %22 }
  0x82   :  { %v1084_v8 = vmul.f32 %v933_v5, %v471_v6  ;;  %v1086_v9 = vmul.f32 %v933_v5, %v23_v7 }
  0x84   :  { %v474_v10 = vand.u32 2147483647, %v1084_v8  ;;  %v477_v11 = vand.u32 2139095040, %v1084_v8  ;;  %v26_v12 = vand.u32 2147483647, %v1086_v9  ;;  %v29_v13 = vand.u32 2139095040, %v1086_v9 }
  0x86   :  { %v478_v14 = vshrl.u32 %v477_v11, 23  ;;  %v481_v15 = vand.u32 8388607, %v474_v10  ;;  %v33_v16 = vand.u32 8388607, %v26_v12  ;;  %v697_v17 = vpop.permute.xlu1 %696  ;;  %v30_v18 = vshrl.u32 %v29_v13, 23  ;;  %v245_v21 = vpop.permute.xlu0 %244 }
  0x87   :  { %v1096_v19 = vmul.f32 %v933_v5, %v697_v17  ;;  %v1100_v30 = vmul.f32 %v933_v5, %v245_v21 }
  0x88   :  { %v950_v20 = vadd.s32 4294967169, %v478_v14  ;;  %v482_v22 = vor.u32 8388608, %v481_v15  ;;  %v934_v23 = vadd.s32 4294967169, %v30_v18  ;;  %v34_v26 = vor.u32 8388608, %v33_v16 }
  0x89   :  { %v703_v24 = vand.u32 2139095040, %v1096_v19  ;;  %v700_v28 = vand.u32 2147483647, %v1096_v19  ;;  %v251_v40 = vand.u32 2139095040, %v1100_v30 }
  0x8a   :  { %v484_v25 = vadd.s32 1, %v950_v20  ;;  %v36_v27 = vadd.s32 1, %v934_v23  ;;  %v1102_v32 = vshll.u32 %v482_v22, 8  ;;  %v1104_v36 = vshll.u32 %v34_v26, 8 }
  0x8b   :  { %v704_v29 = vshrl.u32 %v703_v24, 23  ;;  %v1110_v39 = vand.u32 8388607, %v700_v28 }
  0x8c   :  { %vm485_vm0 = vcmp.gt.s32.totalorder %v484_v25, 0  ;;  %vm37_vm1 = vcmp.gt.s32.totalorder %v36_v27, 0 }
  0x8d   :  { %v486_v31 = vsel %vm485_vm0, %v484_v25, 0  ;;  %v38_v35 = vsel %vm37_vm1, %v36_v27, 0  ;;  %v958_v38 = vadd.s32 4294967169, %v704_v29 }
  0x8e   :  { %v487_v33 = vshrl.u32 %v486_v31, 5  ;;  %v488_v34 = vand.u32 31, %v486_v31  ;;  %v1106_v37 = vand.u32 31, %v38_v35  ;;  %v1118_v52 = vshrl.u32 %v38_v35, 5 }
  0x8f   :  { %v710_v2 = vadd.s32 1, %v958_v38 }
  0x90   :  { %v489_v41 = vsub.s32 32, %v488_v34  ;;  %v491_v43 = vshll.u32 %v1049_v42, %v488_v34  ;;  %v494_v45 = vshll.u32 %v1050_v44, %v488_v34  ;;  %v497_v47 = vshll.u32 %v1051_v46, %v488_v34 }
  0x91   :  { %v500_v49 = vshll.u32 %v1052_v48, %v488_v34  ;;  %v503_v51 = vshll.u32 %v1053_v50, %v488_v34  ;;  %vm506_vm2 = vcmp.lt.s32.totalorder %v487_v33, 1  ;;  %vm508_vm3 = vcmp.lt.s32.totalorder %v487_v33, 3 }
  0x92   :  { %v490_v53 = vshrl.u32 %v1049_v42, %v489_v41  ;;  %v492_v54 = vshrl.u32 %v1050_v44, %v489_v41  ;;  %v495_v55 = vshrl.u32 %v1051_v46, %v489_v41  ;;  %v498_v56 = vshrl.u32 %v1052_v48, %v489_v41 }
  0x93   :  { %v501_v57 = vshrl.u32 %v1053_v50, %v489_v41  ;;  %v504_v59 = vshrl.u32 %v1054_v58, %v489_v41  ;;  %vm509_vm4 = vcmp.lt.s32.totalorder %v487_v33, 4  ;;  %v41_v63 = vsub.s32 32, %v1106_v37 }
  0x94   :  { %v493_v60 = vor.u32 %v492_v54, %v491_v43  ;;  %v496_v61 = vor.u32 %v495_v55, %v494_v45  ;;  %v499_v62 = vor.u32 %v498_v56, %v497_v47  ;;  %vm507_vm5 = vcmp.lt.s32.totalorder %v487_v33, 2 }
  0x95   :  { %v502_v0 = vor.u32 %v501_v57, %v500_v49  ;;  %v505_v1 = vor.u32 %v504_v59, %v503_v51  ;;  %v43_v14 = vshll.u32 %v1049_v42, %v1106_v37  ;;  %v44_v17 = vshrl.u32 %v1050_v44, %v41_v63 }
  0x96   :  { %v510_v3 = vsel %vm506_vm2, %v490_v53, %v493_v60  ;;  %v511_v4 = vsel %vm509_vm4, %v499_v62, 2102212464  ;;  %v514_v5 = vsel %vm506_vm2, %v493_v60, %v496_v61  ;;  %v518_v6 = vsel %vm506_vm2, %v496_v61, %v499_v62 }
  0x97   :  { %v512_v7 = vsel %vm508_vm3, %v496_v61, %v511_v4  ;;  %v515_v11 = vsel %vm509_vm4, %v502_v0, 920167782  ;;  %v519_v13 = vsel %vm509_vm4, %v505_v1, 1326507024  ;;  %v46_v18 = vshll.u32 %v1050_v44, %v1106_v37 }
  0x98   :  { %v516_v15 = vsel %vm508_vm3, %v499_v62, %v515_v11  ;;  %v520_v16 = vsel %vm508_vm3, %v502_v0, %v519_v13  ;;  %v513_v20 = vsel %vm507_vm5, %v510_v3, %v512_v7  ;;  %v47_v23 = vshrl.u32 %v1051_v46, %v41_v63 }
  0x99   :  { %v517_v21 = vsel %vm507_vm5, %v514_v5, %v516_v15  ;;  %v521_v22 = vsel %vm507_vm5, %v518_v6, %v520_v16  ;;  %v45_v29 = vor.u32 %v44_v17, %v43_v14  ;;  %v49_v34 = vshll.u32 %v1051_v46, %v1106_v37 }
  0x9a   :  { %v1143_v24 = vmul.u32.u64.low %v1102_v32, %v521_v22  ;;  %v1144_v25 = vmul.u32.u64.high %v1102_v32, %v521_v22, %v1143_v24  ;;  %v1147_v26 = vmul.u32.u64.low %v1102_v32, %v517_v21  ;;  %v1148_v27 = vmul.u32.u64.high %v1102_v32, %v517_v21, %v1147_v26 }
  0x9b   :  { %v48_v31 = vor.u32 %v47_v23, %v46_v18  ;;  %v50_v35 = vshrl.u32 %v1052_v48, %v41_v63  ;;  %v42_v33 = vshrl.u32 %v1049_v42, %v41_v63  ;;  %v52_v38 = vshll.u32 %v1052_v48, %v1106_v37 }
  0x9c   :  { %v53_v41 = vshrl.u32 %v1053_v50, %v41_v63  ;;  %v56_v43 = vshrl.u32 %v1054_v58, %v41_v63  ;;  %v529_v45 = vmul.u32 %v1102_v32, %v513_v20  ;;  %v55_v49 = vshll.u32 %v1053_v50, %v1106_v37 }
  0x9d   :  { %v51_v47 = vor.u32 %v50_v35, %v49_v34  ;;  %vm58_vm6 = vcmp.lt.s32.totalorder %v1118_v52, 1  ;;  %vm531_vm7 = vc.u32 %v1144_v25, %v1147_v26  ;;  %v532_v51 = vadd.s32 1, %v1148_v27 }
  0x9e   :  { %v54_v53 = vor.u32 %v53_v41, %v52_v38  ;;  %vm59_vm8 = vcmp.lt.s32.totalorder %v1118_v52, 2  ;;  %v57_v54 = vor.u32 %v56_v43, %v55_v49  ;;  %vm60_vm9 = vcmp.lt.s32.totalorder %v1118_v52, 3 }
  0x9f   :  { %vm61_vm10 = vcmp.lt.s32.totalorder %v1118_v52, 4  ;;  %v66_v32 = vsel %vm58_vm6, %v45_v29, %v48_v31  ;;  %v533_v55 = vsel %vm531_vm7, %v532_v51, %v1148_v27  ;;  %v70_v57 = vsel %vm58_vm6, %v48_v31, %v51_v47 }
  0xa0   :  { %v63_v56 = vsel %vm61_vm10, %v51_v47, 2102212464  ;;  %v67_v37 = vsel %vm61_vm10, %v54_v53, 920167782  ;;  %v534_v59 = vadd.s32 %v533_v55, %v529_v45  ;;  %v62_v60 = vsel %vm58_vm6, %v42_v33, %v45_v29 }
  0xa1   :  { %v68_v61 = vsel %vm60_vm9, %v51_v47, %v67_v37  ;;  %v71_v62 = vsel %vm61_vm10, %v57_v54, 1326507024  ;;  %v64_v63 = vsel %vm60_vm9, %v48_v31, %v63_v56  ;;  %vm711_vm11 = vcmp.gt.s32.totalorder %v710_v2, 0 }
  0xa2   :  { %v69_v0 = vsel %vm59_vm8, %v66_v32, %v68_v61  ;;  %v72_v1 = vsel %vm60_vm9, %v54_v53, %v71_v62  ;;  %v535_v3 = vadd.s32 536870912, %v534_v59  ;;  %v712_v13 = vsel %vm711_vm11, %v710_v2, 0 }
  0xa3   :  { %v73_v4 = vsel %vm59_vm8, %v70_v57, %v72_v1  ;;  %v1175_v5 = vmul.u32.u64.low %v1104_v36, %v69_v0  ;;  %v1176_v6 = vmul.u32.u64.high %v1104_v36, %v69_v0, %v1175_v5  ;;  %v65_v15 = vsel %vm59_vm8, %v62_v60, %v64_v63 }
  0xa4   :  { %v1180_v7 = vmul.u32.u64.low %v1104_v36, %v73_v4  ;;  %v1181_v11 = vmul.u32.u64.high %v1104_v36, %v73_v4, %v1180_v7  ;;  %v1183_v14 = vshrl.u32 %v535_v3, 30  ;;  %v714_v16 = vand.u32 31, %v712_v13 }
  0xa5   :  { %v708_v17 = vor.u32 8388608, %v1110_v39  ;;  %v248_v18 = vand.u32 2147483647, %v1100_v30  ;;  %v252_v20 = vshrl.u32 %v251_v40, 23  ;;  %v84_v22 = vadd.s32 1, %v1176_v6 }
  0xa6   :  { %v537_v21 = vshll.u32 %v1183_v14, 30  ;;  %v715_v23 = vsub.s32 32, %v714_v16  ;;  %v717_v2 = vshll.u32 %v1049_v42, %v714_v16  ;;  %v81_v24 = vmul.u32 %v1104_v36, %v65_v15 }
  0xa7   :  { %vm83_vm12 = vc.u32 %v1181_v11, %v1175_v5  ;;  %v720_v52 = vshll.u32 %v1050_v44, %v714_v16  ;;  %v723_v39 = vshll.u32 %v1051_v46, %v714_v16  ;;  %v713_v29 = vshrl.u32 %v712_v13, 5 }
  0xa8   :  { %v1199_v27 = vsub.s32 %v534_v59, %v537_v21  ;;  %v85_v40 = vsel %vm83_vm12, %v84_v22, %v1176_v6  ;;  %v718_v31 = vshrl.u32 %v1050_v44, %v715_v23  ;;  %v721_v35 = vshrl.u32 %v1051_v46, %v715_v23 }
  0xa9   :  { %v86_v34 = vadd.s32 %v85_v40, %v81_v24  ;;  %v724_v33 = vshrl.u32 %v1052_v48, %v715_v23  ;;  %v726_v36 = vshll.u32 %v1052_v48, %v714_v16  ;;  %v727_v43 = vshrl.u32 %v1053_v50, %v715_v23 }
  0xaa   :  { %v540_v38 = vsub.s32 0, %v1199_v27  ;;  %v719_v41 = vor.u32 %v718_v31, %v717_v2  ;;  %v729_v45 = vshll.u32 %v1053_v50, %v714_v16  ;;  %v722_v49 = vor.u32 %v721_v35, %v720_v52 }
  0xab   :  { %v87_v47 = vadd.s32 536870912, %v86_v34  ;;  %v725_v51 = vor.u32 %v724_v33, %v723_v39  ;;  %v730_v53 = vshrl.u32 %v1054_v58, %v715_v23  ;;  %v716_v32 = vshrl.u32 %v1049_v42, %v715_v23 }
  0xac   :  { %v951_v54 = vmin.u32 %v540_v38, %v1199_v27  ;;  %v728_v55 = vor.u32 %v727_v43, %v726_v36  ;;  %vm732_vm13 = vcmp.lt.s32.totalorder %v713_v29, 1  ;;  %vm734_vm14 = vcmp.lt.s32.totalorder %v713_v29, 3 }
  0xad   :  { %v1212_v56 = vshrl.u32 %v87_v47, 30  ;;  %v731_v37 = vor.u32 %v730_v53, %v729_v45  ;;  %vm735_vm15 = vcmp.lt.s32.totalorder %v713_v29, 4  ;;  %vm733_vm0 = vcmp.lt.s32.totalorder %v713_v29, 2 }
  0xae   :  { %v737_v57 = vsel %vm735_vm15, %v725_v51, 2102212464  ;;  %v740_v59 = vsel %vm732_vm13, %v719_v41, %v722_v49  ;;  %v748_v60 = vshll.u32 %v708_v17, 8  ;;  %v741_v62 = vsel %vm735_vm15, %v728_v55, 920167782 }
  0xaf   :  { %v89_v61 = vshll.u32 %v1212_v56, 30  ;;  %v744_v63 = vsel %vm732_vm13, %v722_v49, %v725_v51  ;;  %v942_v0 = vadd.s32 4294967169, %v252_v20  ;;  %v542_v1 = vclz %v951_v54 }
  0xb0   :  { %v736_v3 = vsel %vm732_vm13, %v716_v32, %v719_v41  ;;  %v742_v4 = vsel %vm734_vm14, %v725_v51, %v741_v62  ;;  %v745_v6 = vsel %vm735_vm15, %v731_v37, 1326507024  ;;  %v738_v13 = vsel %vm734_vm14, %v722_v49, %v737_v57 }
  0xb1   :  { %v90_v7 = vsub.s32 %v86_v34, %v89_v61  ;;  %v743_v15 = vsel %vm733_vm0, %v740_v59, %v742_v4  ;;  %v746_v16 = vsel %vm734_vm14, %v728_v55, %v745_v6  ;;  %v739_v24 = vsel %vm733_vm0, %v736_v3, %v738_v13 }
  0xb2   :  { %v747_v21 = vsel %vm733_vm0, %v744_v63, %v746_v16  ;;  %v1220_v17 = vmul.u32.u64.low %v748_v60, %v743_v15  ;;  %v1221_v22 = vmul.u32.u64.high %v748_v60, %v743_v15, %v1220_v17  ;;  %v255_v52 = vand.u32 8388607, %v248_v18 }
  0xb3   :  { %v92_v23 = vsub.s32 0, %v90_v7  ;;  %v1224_v20 = vmul.u32.u64.low %v748_v60, %v747_v21  ;;  %v1225_v2 = vmul.u32.u64.high %v748_v60, %v747_v21, %v1224_v20  ;;  %v258_v39 = vadd.s32 1, %v942_v0 }
  0xb4   :  { %v952_v40 = vadd.s32 4294967294, %v542_v1  ;;  %v758_v34 = vadd.s32 1, %v1221_v22  ;;  %v755_v33 = vmul.u32 %v748_v60, %v739_v24  ;;  %v256_v41 = vor.u32 8388608, %v255_v52 }
  0xb5   :  { %v935_v31 = vmin.u32 %v92_v23, %v90_v7  ;;  %vm259_vm1 = vcmp.gt.s32.totalorder %v258_v39, 0  ;;  %vm757_vm2 = vc.u32 %v1225_v2, %v1220_v17  ;;  %v82_v47 = vadd.s32 %v1175_v5, %v1181_v11 }
  0xb6   :  { %v260_v36 = vsel %vm259_vm1, %v258_v39, 0  ;;  %v759_v38 = vsel %vm757_vm2, %v758_v34, %v1221_v22  ;;  %vm953_vm3 = vcmp.lt.s32.totalorder %v952_v40, 0  ;;  %v1240_v55 = vshll.u32 %v256_v41, 8 }
  0xb7   :  { %v94_v35 = vclz %v935_v31  ;;  %v760_v43 = vadd.s32 %v759_v38, %v755_v33  ;;  %v262_v45 = vand.u32 31, %v260_v36  ;;  %v1236_v53 = vsel %vm953_vm3, 0, %v952_v40 }
  0xb8   :  { %v1238_v32 = vshrl.u32 %v260_v36, 5  ;;  %vm28_vm5 = vcmp.lt.s32.totalorder %v1086_v9, 0  ;;  %vm27_vm11 = vcmp.le.f32.partialorder %v26_v12, 0.7853982  ;;  %vm118_vm13 = vweird.f32 %v1086_v9 }
  0xb9   :  { %v936_v29 = vadd.s32 4294967294, %v94_v35  ;;  %v761_v49 = vadd.s32 536870912, %v760_v43  ;;  %v263_v51 = vsub.s32 32, %v262_v45  ;;  %v265_v60 = vshll.u32 %v1049_v42, %v262_v45 }
  0xba   :  { %v268_v5 = vshll.u32 %v1050_v44, %v262_v45  ;;  %v271_v13 = vshll.u32 %v1051_v46, %v262_v45  ;;  %v277_v20 = vshll.u32 %v1053_v50, %v262_v45  ;;  %vm280_vm6 = vcmp.lt.s32.totalorder %v1238_v32, 1 }
  0xbb   :  { %vm937_vm4 = vcmp.lt.s32.totalorder %v936_v29, 0  ;;  %v1242_v59 = vshrl.u32 %v761_v49, 30  ;;  %v266_v62 = vshrl.u32 %v1050_v44, %v263_v51  ;;  %v269_v11 = vshrl.u32 %v1051_v46, %v263_v51 }
  0xbc   :  { %v97_v54 = vsel %vm937_vm4, 0, %v936_v29  ;;  %v272_v3 = vshrl.u32 %v1052_v48, %v263_v51  ;;  %v274_v44 = vshll.u32 %v1052_v48, %v262_v45  ;;  %v275_v23 = vshrl.u32 %v1053_v50, %v263_v51 }
  0xbd   :  { %v98_v37 = vsub.s32 32, %v97_v54  ;;  %v102_v57 = vsub.s32 4294967266, %v97_v54  ;;  %v99_v61 = vshll.u32 %v90_v7, %v97_v54  ;;  %v763_v1 = vshll.u32 %v1242_v59, 30 }
  0xbe   :  { %v267_v4 = vor.u32 %v266_v62, %v265_v60  ;;  %v270_v6 = vor.u32 %v269_v11, %v268_v5  ;;  %v112_v7 = vsub.s32 4, %v1212_v56  ;;  %v273_v22 = vor.u32 %v272_v3, %v271_v13 }
  0xbf   :  { %v100_v63 = vshrl.u32 %v82_v47, %v98_v37  ;;  %v103_v0 = vadd.s32 127, %v102_v57  ;;  %v1253_v21 = vsub.s32 %v760_v43, %v763_v1  ;;  %v278_v24 = vshrl.u32 %v1054_v58, %v263_v51 }
  0xc0   :  { %v264_v46 = vshrl.u32 %v1049_v42, %v263_v51  ;;  %v276_v31 = vor.u32 %v275_v23, %v274_v44  ;;  %vm282_vm7 = vcmp.lt.s32.totalorder %v1238_v32, 3  ;;  %vm283_vm8 = vcmp.lt.s32.totalorder %v1238_v32, 4 }
  0xc1   :  { %v101_v15 = vor.u32 %v100_v63, %v99_v61  ;;  %v104_v16 = vshll.u32 %v103_v0, 23  ;;  %v766_v39 = vsub.s32 0, %v1253_v21  ;;  %v279_v34 = vor.u32 %v278_v24, %v277_v20 }
  0xc2   :  { %v288_v50 = vsel %vm280_vm6, %v267_v4, %v270_v6  ;;  %v285_v58 = vsel %vm283_vm8, %v273_v22, 2102212464  ;;  %v289_v33 = vsel %vm283_vm8, %v276_v31, 920167782  ;;  %v292_v42 = vsel %vm280_vm6, %v270_v6, %v273_v22 }
  0xc3   :  { %v105_v52 = vor.u32 4788187, %v104_v16  ;;  %v108_v40 = vcvt.s32.f32 %v101_v15  ;;  %v959_v35 = vmin.u32 %v766_v39, %v1253_v21  ;;  %v293_v36 = vsel %vm283_vm8, %v279_v34, 1326507024 }
  0xc4   :  { %vm281_vm9 = vcmp.lt.s32.totalorder %v1238_v32, 2  ;;  %v290_v29 = vsel %vm282_vm7, %v273_v22, %v289_v33  ;;  %v284_v43 = vsel %vm280_vm6, %v264_v46, %v267_v4  ;;  %v294_v47 = vsel %vm282_vm7, %v276_v31, %v293_v36 }
  0xc5   :  { %v106_v48 = vand.u32 2147483647, %v105_v52  ;;  %v768_v41 = vclz %v959_v35  ;;  %v291_v45 = vsel %vm281_vm9, %v288_v50, %v290_v29  ;;  %v113_v49 = vsel %vm28_vm5, %v112_v7, %v1212_v56 }
  0xc6   :  { %v286_v37 = vsel %vm282_vm7, %v270_v6, %v285_v58  ;;  %v295_v57 = vsel %vm281_vm9, %v292_v42, %v294_v47  ;;  %v1290_v62 = vmul.u32.u64.low %v1240_v55, %v291_v45  ;;  %v1291_v5 = vmul.u32.u64.high %v1240_v55, %v291_v45, %v1290_v62 }
  0xc7   :  { %v109_v38 = vmul.f32 %v108_v40, %v106_v48  ;;  %v960_v54 = vadd.s32 4294967294, %v768_v41  ;;  %v1286_v60 = vmul.u32.u64.low %v1240_v55, %v295_v57  ;;  %v1287_v61 = vmul.u32.u64.high %v1240_v55, %v295_v57, %v1286_v60 }
  0xc8   :  { %v550_v11 = vsub.s32 4294967266, %v1236_v53  ;;  %v287_v63 = vsel %vm281_vm9, %v284_v43, %v286_v37  ;;  %v115_v1 = vsel %vm27_vm11, 0, %v113_v49  ;;  %v306_v4 = vadd.s32 1, %v1291_v5 }
  0xc9   :  { %v110_v51 = vxor.u32 2147483648, %v109_v38  ;;  %vm961_vm10 = vcmp.lt.s32.totalorder %v960_v54, 0  ;;  %vm305_vm12 = vc.u32 %v1287_v61, %v1290_v62  ;;  %v546_v6 = vsub.s32 32, %v1236_v53 }
  0xca   :  { %v771_v3 = vsel %vm961_vm10, 0, %v960_v54  ;;  %v551_v13 = vadd.s32 127, %v550_v11  ;;  %v303_v7 = vmul.u32 %v1240_v55, %v287_v63  ;;  %v307_v12 = vsel %vm305_vm12, %v306_v4, %v1291_v5 }
  0xcb   :  { %v111_v56 = vsel %vm28_vm5, %v110_v51, %v109_v38  ;;  %v119_v32 = vadd.s32 3, %v115_v1  ;;  %v530_v15 = vadd.s32 %v1147_v26, %v1144_v25  ;;  %v776_v16 = vsub.s32 4294967266, %v771_v3 }
  0xcc   :  { %v114_v0 = vsel %vm27_vm11, %v1086_v9, %v111_v56  ;;  %v308_v44 = vadd.s32 %v307_v12, %v303_v7  ;;  %v552_v23 = vshll.u32 %v551_v13, 23  ;;  %v772_v20 = vsub.s32 32, %v771_v3 }
  0xcd   :  { %1005 = vcosq.f32 %v114_v0  ;;  %v548_v22 = vshrl.u32 %v530_v15, %v546_v6  ;;  %v547_v52 = vshll.u32 %v1199_v27, %v1236_v53  ;;  %v120_v39 = vand.u32 3, %v119_v32 }
  0xce   :  { %1007 = vsinq.f32 %v114_v0  ;;  %v309_v24 = vadd.s32 536870912, %v308_v44  ;;  %v756_v46 = vadd.s32 %v1220_v17, %v1225_v2  ;;  %v777_v55 = vadd.s32 127, %v776_v16 }
  0xcf   :  { %v225_v31 = vand.u32 3, %v115_v1  ;;  %v549_v26 = vor.u32 %v548_v22, %v547_v52  ;;  %v553_v34 = vor.u32 4788187, %v552_v23  ;;  %vm121_vm14 = vcmp.lt.s32.totalorder %v120_v39, 2 }
  0xd0   :  { %v1314_v40 = vshrl.u32 %v309_v24, 30  ;;  %v774_v48 = vshrl.u32 %v756_v46, %v772_v20  ;;  %vm122_vm15 = vcmp.eq.s32.totalorder %v120_v39, 0  ;;  %vm125_vm0 = vcmp.eq.s32.totalorder %v120_v39, 2 }
  0xd1   :  { %v778_v53 = vshll.u32 %v777_v55, 23  ;;  %vm230_vm1 = vcmp.eq.s32.totalorder %v225_v31, 2  ;;  %vm226_vm2 = vcmp.lt.s32.totalorder %v225_v31, 2  ;;  %vm227_vm3 = vcmp.eq.s32.totalorder %v225_v31, 0 }
  0xd2   :  { %v311_v35 = vshll.u32 %v1314_v40, 30  ;;  %vm130_vm4 = vcmask 130048   ;;  %v554_v41 = vand.u32 2147483647, %v553_v34  ;;  %v773_v29 = vshll.u32 %v1253_v21, %v771_v3 }
  0xd3   :  { %v779_v47 = vor.u32 4788187, %v778_v53  ;;  %v556_v37 = vcvt.s32.f32 %v549_v26  ;;  %v304_v3 = vadd.s32 %v1290_v62, %v1287_v61  ;;  %vm476_vm6 = vcmp.lt.s32.totalorder %v1084_v8, 0 }
  0xd4   :  { %v312_v58 = vsub.s32 %v308_v44, %v311_v35  ;;  %v775_v57 = vor.u32 %v774_v48, %v773_v29  ;;  %vm1331_vm7 = vcmp.le.f32.partialorder %v474_v10, 0.7853982  ;;  %vm702_vm8 = vcmp.lt.s32.totalorder %v1096_v19, 0 }
  0xd5   :  { %v557_v5 = vmul.f32 %v556_v37, %v554_v41  ;;  %v780_v11 = vand.u32 2147483647, %v779_v47  ;;  %v560_v61 = vsub.s32 4, %v1183_v14  ;;  %v334_v52 = vsub.s32 4, %v1314_v40 }
  0xd6   :  { %v314_v42 = vsub.s32 0, %v312_v58  ;;  %v782_v56 = vcvt.s32.f32 %v775_v57  ;;  %vm1345_vm9 = vcmp.le.f32.partialorder %v700_v28, 0.7853982  ;;  %vm250_vm10 = vcmp.lt.s32.totalorder %v1100_v30, 0 }
  0xd7   :  { %v1006_v25 = vpop.eup %1005  ;;  %v558_v63 = vxor.u32 2147483648, %v557_v5  ;;  %v561_v46 = vsel %vm476_vm6, %v560_v61, %v1183_v14  ;;  %v335_v26 = vsel %vm250_vm10, %v334_v52, %v1314_v40  ;;  %vm249_vm11 = vcmp.le.f32.partialorder %v248_v18, 0.7853982 }
  0xd8   :  { %v1008_v50 = vpop.eup %1007  ;;  %v126_v27 = vxor.u32 2147483648, %v1006_v25  ;;  %v943_v49 = vmin.u32 %v314_v42, %v312_v58  ;;  %v783_v1 = vmul.f32 %v782_v56, %v780_v11  ;;  %v563_v34 = vsel %vm1331_vm7, 0, %v561_v46 }
  0xd9   :  { %v123_v17 = vxor.u32 2147483648, %v1008_v50  ;;  %v559_v12 = vsel %vm476_vm6, %v558_v63, %v557_v5  ;;  %v337_v48 = vsel %vm249_vm11, 0, %v335_v26  ;;  %vm340_vm12 = vweird.f32 %v1100_v30 }
  0xda   :  { %v232_v2 = vsel %vm230_vm1, %v126_v27, %v1008_v50  ;;  %v127_v33 = vsel %vm125_vm0, %v126_v27, %v1008_v50  ;;  %v316_v60 = vclz %v943_v49  ;;  %v784_v32 = vxor.u32 2147483648, %v783_v1 }
  0xdb   :  { %v229_v36 = vsel %vm227_vm3, %v1006_v25, %v123_v17  ;;  %v124_v38 = vsel %vm122_vm15, %v1006_v25, %v123_v17  ;;  %v562_v62 = vsel %vm1331_vm7, %v1084_v8, %v559_v12  ;;  %v786_v25 = vsub.s32 4, %v1242_v59 }
  0xdc   :  { %v233_v43 = vsel %vm226_vm2, %v229_v36, %v232_v2  ;;  %v128_v45 = vsel %vm121_vm14, %v124_v38, %v127_v33  ;;  %v944_v21 = vadd.s32 4294967294, %v316_v60  ;;  %v785_v23 = vsel %vm702_vm8, %v784_v32, %v783_v1 }
  0xdd   :  { %v234_v51 = vsel %vm118_vm13, nan, %v233_v43  ;;  %v129_v54 = vsel %vm118_vm13, nan, %v128_v45  ;;  %1009 = vcosq.f32 %v562_v62  ;;  %v788_v55 = vsel %vm1345_vm9, %v1096_v19, %v785_v23 }
  0xde   :  { %236 = vrot.lane.b32.xlu1 %v234_v51, %s1055_s0  ;;  %131 = vst.msk [vmem:[#allocation2] sm:$0xff] %vm130_vm4, %v129_v54  ;;  %vm945_vm5 = vcmp.lt.s32.totalorder %v944_v21, 0  ;;  %1011 = vsinq.f32 %v562_v62  ;;  %v787_v35 = vsel %vm702_vm8, %v786_v25, %v1242_v59  ;;  %v567_v50 = vadd.s32 3, %v563_v34 }
  0xdf   :  { %v319_v0 = vsel %vm945_vm5, 0, %v944_v21  ;;  %1013 = vcosq.f32 %v788_v55  ;;  %v341_v40 = vadd.s32 3, %v337_v48  ;;  %v789_v27 = vsel %vm1345_vm9, 0, %v787_v35 }
  0xe0   :  { %v320_v4 = vsub.s32 32, %v319_v0  ;;  %v324_v9 = vsub.s32 4294967266, %v319_v0  ;;  %v321_v6 = vshll.u32 %v312_v58, %v319_v0  ;;  %1015 = vsinq.f32 %v788_v55 }
  0xe1   :  { %v568_v58 = vand.u32 3, %v567_v50  ;;  %v677_v17 = vand.u32 3, %v563_v34  ;;  %v451_v2 = vand.u32 3, %v337_v48  ;;  %v793_v33 = vadd.s32 3, %v789_v27 }
  0xe2   :  { %v322_v13 = vshrl.u32 %v304_v3, %v320_v4  ;;  %v325_v7 = vadd.s32 127, %v324_v9  ;;  %v342_v42 = vand.u32 3, %v341_v40  ;;  %v903_v11 = vand.u32 3, %v789_v27 }
  0xe3   :  { %vm570_vm13 = vcmp.eq.s32.totalorder %v568_v58, 0  ;;  %vm573_vm14 = vcmp.eq.s32.totalorder %v568_v58, 2  ;;  %vm679_vm15 = vcmp.eq.s32.totalorder %v677_v17, 0  ;;  %vm682_vm0 = vcmp.eq.s32.totalorder %v677_v17, 2 }
  0xe4   :  { %v323_v15 = vor.u32 %v322_v13, %v321_v6  ;;  %v326_v16 = vshll.u32 %v325_v7, 23  ;;  %vm452_vm1 = vcmp.lt.s32.totalorder %v451_v2, 2  ;;  %vm453_vm2 = vcmp.eq.s32.totalorder %v451_v2, 0 }
  0xe5   :  { %vm456_vm3 = vcmp.eq.s32.totalorder %v451_v2, 2  ;;  %v794_v43 = vand.u32 3, %v793_v33  ;;  %vm343_vm4 = vcmp.lt.s32.totalorder %v342_v42, 2  ;;  %vm344_vm5 = vcmp.eq.s32.totalorder %v342_v42, 0 }
  0xe6   :  { %v327_v44 = vor.u32 4788187, %v326_v16  ;;  %v330_v24 = vcvt.s32.f32 %v323_v15  ;;  %vm347_vm6 = vcmp.eq.s32.totalorder %v342_v42, 2  ;;  %vm569_vm7 = vcmp.lt.s32.totalorder %v568_v58, 2 }
  0xe7   :  { %v1010_v18 = vpop.eup %1009  ;;  %vm678_vm8 = vcmp.lt.s32.totalorder %v677_v17, 2  ;;  %vm796_vm9 = vcmp.eq.s32.totalorder %v794_v43, 0 }
  0xe8   :  { %v328_v20 = vand.u32 2147483647, %v327_v44  ;;  %v1012_v53 = vpop.eup %1011  ;;  %v574_v36 = vxor.u32 2147483648, %v1010_v18 }
  0xe9   :  { %v1014_v38 = vpop.eup %1013  ;;  %v571_v41 = vxor.u32 2147483648, %v1012_v53 }
  0xea   :  { %v331_v39 = vmul.f32 %v330_v24, %v328_v20  ;;  %v1016_v29 = vpop.eup %1015  ;;  %v575_v49 = vsel %vm573_vm14, %v574_v36, %v1012_v53  ;;  %v684_v51 = vsel %vm682_vm0, %v574_v36, %v1012_v53  ;;  %v800_v0 = vxor.u32 2147483648, %v1014_v38 }
  0xeb   :  { %v572_v37 = vsel %vm570_vm13, %v1010_v18, %v571_v41  ;;  %v681_v5 = vsel %vm679_vm15, %v1010_v18, %v571_v41  ;;  %v797_v63 = vxor.u32 2147483648, %v1016_v29  ;;  %vm908_vm13 = vcmp.eq.s32.totalorder %v903_v11, 2 }
  0xec   :  { %v332_v31 = vxor.u32 2147483648, %v331_v39  ;;  %v576_v6 = vsel %vm569_vm7, %v572_v37, %v575_v49  ;;  %v685_v13 = vsel %vm678_vm8, %v681_v5, %v684_v51  ;;  %v910_v15 = vsel %vm908_vm13, %v800_v0, %v1016_v29 }
  0xed   :  { %v798_v7 = vsel %vm796_vm9, %v1014_v38, %v797_v63  ;;  %vm566_vm14 = vweird.f32 %v1084_v8  ;;  %vm795_vm15 = vcmp.lt.s32.totalorder %v794_v43, 2  ;;  %vm792_vm0 = vweird.f32 %v1096_v19 }
  0xee   :  { %v333_v28 = vsel %vm250_vm10, %v332_v31, %v331_v39  ;;  %vm799_vm10 = vcmp.eq.s32.totalorder %v794_v43, 2  ;;  %v577_v16 = vsel %vm566_vm14, nan, %v576_v6  ;;  %v686_v44 = vsel %vm566_vm14, nan, %v685_v13 }
  0xef   :  { %v336_v14 = vsel %vm249_vm11, %v1100_v30, %v333_v28  ;;  %vm905_vm11 = vcmp.eq.s32.totalorder %v903_v11, 0  ;;  %v801_v12 = vsel %vm799_vm10, %v800_v0, %v1016_v29  ;;  %vm917_vm7 = vcmask 1048448  }
  0xf0   :  { %1017 = vcosq.f32 %v336_v14  ;;  %v907_v32 = vsel %vm905_vm11, %v1014_v38, %v797_v63  ;;  %v802_v30 = vsel %vm795_vm15, %v798_v7, %v801_v12 }
  0xf1   :  { %1019 = vsinq.f32 %v336_v14  ;;  %v803_v61 = vsel %vm792_vm0, nan, %v802_v30 }
  0xfa   :  { %v1018_v59 = vpop.eup %1017 }
  0xfb   :  { %v1020_v45 = vpop.eup %1019  ;;  %v348_v47 = vxor.u32 2147483648, %v1018_v59 }
  0xfc   :  { %v345_v54 = vxor.u32 2147483648, %v1020_v45 }
  0xfd   :  { %v349_v57 = vsel %vm347_vm6, %v348_v47, %v1020_v45  ;;  %v458_v60 = vsel %vm456_vm3, %v348_v47, %v1020_v45  ;;  %vm465_vm3 = vcmask 523648   ;;  %vm808_vm6 = vcmask 917248  }
  0xfe   :  { %v346_v21 = vsel %vm344_vm5, %v1018_v59, %v345_v54  ;;  %v455_v56 = vsel %vm453_vm2, %v1018_v59, %v345_v54  ;;  %vm356_vm2 = vcmask 392448   ;;  %vm691_vm5 = vcmask 786048  }
  0xff   :  { %v350_v1 = vsel %vm343_vm4, %v346_v21, %v349_v57  ;;  %v459_v3 = vsel %vm452_vm1, %v455_v56, %v458_v60  ;;  %vm239_vm1 = vcmask 261248   ;;  %vm582_vm4 = vcmask 654848  }
 0x100   :  { %v351_v4 = vsel %vm340_vm12, nan, %v350_v1  ;;  %v460_v9 = vsel %vm340_vm12, nan, %v459_v3  ;;  %vm904_vm12 = vcmp.lt.s32.totalorder %v903_v11, 2 }
 0x101   :  { %353 = vrot.lane.b32.xlu0 %v351_v4, %s1056_s1  ;;  %462 = vrot.lane.b32.xlu1 %v460_v9, %s1057_s13  ;;  %v911_v22 = vsel %vm904_vm12, %v907_v32, %v910_v15 }
 0x102   :  { %v912_v62 = vsel %vm792_vm0, nan, %v911_v22 }
 0x105   :  { %579 = vrot.lane.b32.xlu0 %v577_v16, %s1058_s14  ;;  %688 = vrot.lane.b32.xlu1 %v686_v44, %s1059_s15 }
 0x109   :  { %805 = vrot.lane.b32.xlu0 %v803_v61, %s1060_s16  ;;  %914 = vrot.lane.b32.xlu1 %v912_v62, %s1061_s17 }
 0x150   :  { %v237_v8 = vpop.permute.xlu1 %236 }
 0x151   :  { %240 = vst.msk [vmem:[#allocation2] sm:$0xff] %vm239_vm1, %v237_v8 }
 0x173   :  { %v354_v23 = vpop.permute.xlu0 %353  ;;  %v463_v20 = vpop.permute.xlu1 %462 }
 0x174   :  { %357 = vst.msk [vmem:[#allocation2] sm:$0xff] %vm356_vm2, %v354_v23 }
 0x175   :  { %466 = vst.msk [vmem:[#allocation2] sm:$0xff] %vm465_vm3, %v463_v20 }
 0x177   :  { %v580_v24 = vpop.permute.xlu0 %579  ;;  %v689_v52 = vpop.permute.xlu1 %688 }
 0x178   :  { %583 = vst.msk [vmem:[#allocation2] sm:$0xff] %vm582_vm4, %v580_v24 }
 0x179   :  { %692 = vst.msk [vmem:[#allocation2] sm:$0xff] %vm691_vm5, %v689_v52 }
 0x17b   :  { %v806_v19 = vpop.permute.xlu0 %805  ;;  %v915_v39 = vpop.permute.xlu1 %914 }
 0x17c   :  { %809 = vst.msk [vmem:[#allocation2] sm:$0xff] %vm808_vm6, %v806_v19 }
 0x17d   :  { %918 = vst.msk [vmem:[#allocation2] sm:$0xff] %vm917_vm7, %v915_v39 }
 0x17e   :  { %1032 = shalt.err (!%p1029_p4)
}
 0x17f   :  { %s1033_s23 = scalar_lea.hbm %s1394_s2, 128 }
 0x180   :  { %p1034_p5 = scmp.ne.s32.totalorder %s1394_s2, %s1033_s23  ;;  %p1037_p6 = scmp.lt.u32.totalorder %s1033_s23, %s1394_s2 }
 0x182   :  { %p1039_p7 = pnand %p1037_p6, %p1034_p5 }
 0x184   :  { %1042 = shalt.err (!%p1039_p7)
}
 0x185   :  { %928 = dma.vmem_to_hbm [thread:$0]  %s926_s19, 128, %s1394_s2, [#allocation3]  }
 0x186   :  { %1043 = dma.done.wait [#allocation3], 128  }
 0x187   :  { %1044 = vsyncadd [#allocation3], 4294967168 }
 0x188   :  { %932 = vsyncpa [#allocation3], 1 }

</bundles_post_ra>
